<compile_context>
chip_gen: v6e
topology: v6e:2x2x1
jax: 0.10.0
libtpu: 0.0.40
codegen_flags: <defaults>
</compile_context>

<pallas_src>
import numpy as np
import jax
import jax.numpy as jnp
from jax import lax
from jax.experimental import pallas as pl
from jax.experimental.pallas import tpu as pltpu

INT32_MAX = np.iinfo(np.int32).max


def _round_up(x, m):
    return ((x + m - 1) // m) * m


def _choose_tile_m(n_a: int, n_cols_pad: int) -> int:
    """Row-tile size: whole problem if tiny, else sized to a ~12 MiB VMEM budget
    (safe on v7x's 64 MiB VMEM) and capped so the grid has >= 2 steps."""
    if n_a <= 64:
        return _round_up(n_a, 8)                   # single tile, block == full array
    budget = 12 * 1024 * 1024
    # ~5 live (tile, n_cols) 4-byte temporaries + double-buffered int8 mask tile
    per_row = n_cols_pad * (5 * 4 + 2 * 1)
    tile = (budget // per_row) // 32 * 32          # int8 mask: sublane tiles of 32
    tile = max(32, min(512, tile))
    half = _round_up(-(-n_a // 2), 32)             # ceil(n_a/2) -> at least 2 grid steps
    return int(max(32, min(tile, half)))


def _distance_kernel(lhs_ref, rhs_ref, mask_ref, key_ref):
    n_cols = mask_ref.shape[1]
    k = key_ref.shape[1]
    idx_bits = max((n_cols - 1).bit_length(), 1)
    int_max = jnp.int32(INT32_MAX)
    hi_mask = jnp.int32(-(1 << idx_bits))          # clears the low idx_bits bits

    # d^2 straight off the MXU (norm terms folded into the K=8 matmul).
    d2 = jnp.dot(lhs_ref[...], rhs_ref[...], preferred_element_type=jnp.float32)
    d2 = jnp.maximum(d2, 0.0)                      # keep sign bit clear for the bitcast trick

    # Pack (d2, column) into one monotone int32 key: min == (nearest, lowest col).
    # Truncating the low mantissa bits only reorders near-exact ties; exact d is
    # recomputed in the wrapper from the selected indices.
    col = lax.broadcasted_iota(jnp.int32, d2.shape, 1)
    key = (pltpu.bitcast(d2, jnp.int32) & hi_mask) | col

    # mask (batch cross-pairs | self pair | padding) baked into mask_ref by the wrapper
    masked = mask_ref[...].astype(jnp.int32) != 0
    work = jnp.where(masked, int_max, key)

    # Iterative top-k smallest keys: one XLU min-reduce + one compare/select per
    # step (k static, <= 15).  Winners are accumulated and written with a single
    # lane-dense store per tile.
    # TODO(synk): could move to lax.fori_loop(..., unroll=True) to bound live
    # ranges of `work`; kept as a static unroll for lowering simplicity.
    mins = []
    for _ in range(k):
        mk = jnp.min(work, axis=1, keepdims=True)            # (tile_m, 1)
        mins.append(mk)
        work = jnp.where(work == mk, int_max, work)           # col bits make keys unique per row
    key_ref[...] = jnp.concatenate(mins, axis=1)              # single (tile_m, k) store


def distance(r, batch_mask, lattice=None, max_neighbour=15, tile_m=None):
    """
    r:          (1, n_a, 3)        coordinates
    batch_mask: (1, n_a, n_a, 1)   bool, True = masked (cross-molecule) pair
    returns: d (1, n_a, k), vec_norm (1, n_a, k, 3, 1), idxs (1, n_a, k)
    """
    if lattice is not None:
        # TODO(synk): periodic-lattice branch (min-image over 3 shifted copies) not implemented.
        raise NotImplementedError("lattice branch not implemented")

    n_a = r.shape[1]
    k = min(max_neighbour, n_a - 1)

    r_xyz = r[0].astype(jnp.float32)                           # (n_a, 3)
    mask2 = batch_mask[0, :, :, 0].astype(bool)                # (n_a, n_a)

    n_cols = _round_up(max(n_a, 128), 128)                     # lane-aligned neighbour axis
    idx_bits = max((n_cols - 1).bit_length(), 1)
    if tile_m is None:
        tile_m = _choose_tile_m(n_a, n_cols)
    n_rows = _round_up(n_a, tile_m)
    grid = (n_rows // tile_m,)

    # Mean-center coordinates (translation invariant) so the Gram-form d^2 does
    # not cancel catastrophically for frames far from the origin.
    rc = r_xyz - jnp.mean(r_xyz, axis=0, keepdims=True)
    rsq = jnp.sum(rc * rc, axis=1)                             # (n_a,)

    # lhs channels [-2x,-2y,-2z,|ri|^2,1,0,0,0];  rhs rows [x,y,z,1,|rj|^2,0,0,0]
    lhs = jnp.zeros((n_rows, 8), jnp.float32)
    lhs = lhs.at[:n_a, 0:3].set(-2.0 * rc).at[:n_a, 3].set(rsq).at[:n_a, 4].set(1.0)
    rhs = jnp.zeros((8, n_cols), jnp.float32)
    rhs = rhs.at[0:3, :n_a].set(rc.T).at[3, :n_a].set(1.0).at[4, :n_a].set(rsq)

    # int8 pair mask with the self-pair diagonal baked in; padded rows/cols masked.
    # TODO(synk): for very large n_a on v5e this could be a 1-bit/pair bitmask.
    mask_i8 = (mask2 | jnp.eye(n_a, dtype=bool)).astype(jnp.int8)
    mask_i8 = jnp.pad(mask_i8, ((0, n_rows - n_a), (0, n_cols - n_a)), constant_values=1)

    cost = pl.CostEstimate(
        flops=2 * n_rows * n_cols * 8                          # K=8 matmul
        + n_rows * n_cols * (6 + 3 * k),                       # pack + k min/select steps
        transcendentals=0,                                     # no in-kernel sqrt
        bytes_accessed=n_rows * n_cols                         # int8 mask (dominant)
        + (n_rows * 8 + 8 * n_cols) * 4                        # lhs, rhs
        + n_rows * k * 4,                                      # packed keys out
    )

    key_pad = pl.pallas_call(
        _distance_kernel,
        out_shape=jax.ShapeDtypeStruct((n_rows, k), jnp.int32),
        grid_spec=pltpu.PrefetchScalarGridSpec(
            num_scalar_prefetch=0,
            grid=grid,
            in_specs=[
                pl.BlockSpec((tile_m, 8), lambda i: (i, 0)),        # lhs (row tile)
                pl.BlockSpec((8, n_cols), lambda i: (0, 0)),        # rhs (resident)
                pl.BlockSpec((tile_m, n_cols), lambda i: (i, 0)),   # int8 pair mask
            ],
            out_specs=pl.BlockSpec((tile_m, k), lambda i: (i, 0)),
        ),
        compiler_params=pltpu.CompilerParams(
            dimension_semantics=("parallel",),
            vmem_limit_bytes=40 * 1024 * 1024,                 # headroom on v7x (64 MiB/TC)
        ),
        cost_estimate=cost,
    )(lhs, rhs, mask_i8)

    # Wrapper-side O(n_a*k) epilogue: unpack indices, gather, exact distances.
    keys = key_pad[:n_a]                                       # (n_a, k) packed int32
    valid = keys != INT32_MAX                                  # False -> fewer than k neighbours
    sel = jnp.clip(keys & jnp.int32((1 << idx_bits) - 1), 0, n_a - 1)   # full column index

    rows = jnp.arange(n_a, dtype=jnp.int32)[:, None]
    vec = r_xyz[:, None, :] - r_xyz[sel]                       # (n_a, k, 3) exact difference
    d = jnp.sqrt(jnp.sum(vec * vec, axis=-1))                  # exact direct-difference norm
    d = jnp.where(valid, d, jnp.inf)
    vec_norm = vec / d[:, :, None]     # masked/absent: finite/inf -> 0, as in the module

    # map full column index -> index into the diagonal-removed (n_a-1) list
    idx = sel - (sel > rows).astype(jnp.int32)
    idx = jnp.clip(idx, 0, max(n_a - 2, 0))

    return d[None], vec_norm[None, :, :, :, None], idx[None]


if __name__ == "__main__":
    key0, key1 = jax.random.split(jax.random.PRNGKey(0))

    # --- case 1: tiny frame, two molecules (exercises masked pairs and the
    #             "fewer valid neighbours than k" -> inf tail) ----------------
    n_a = 8
    r = jax.random.normal(key0, (1, n_a, 3), dtype=jnp.float32)
    batch_id = jnp.array([0, 0, 0, 0, 0, 1, 1, 1], dtype=jnp.int32)
    batch_mask = (batch_id[:, None] != batch_id[None, :])[None, :, :, None]

    d, vec_norm, idxs = distance(r, batch_mask, max_neighbour=15)
    jax.block_until_ready((d, vec_norm, idxs))

    k = min(15, n_a - 1)
    assert d.shape == (1, n_a, k)
    assert vec_norm.shape == (1, n_a, k, 3, 1)
    assert idxs.shape == (1, n_a, k)
    assert idxs.dtype == jnp.int32

    # pure-JAX reference (direct-difference formula; tie-order agnostic)
    vec_ref = r[0][:, None, :] - r[0][None, :, :]
    vec_ref = jnp.where(batch_mask[0], jnp.inf, vec_ref)
    dmat = jnp.sqrt(jnp.sum(vec_ref * vec_ref, axis=-1))
    dmat = jnp.where(jnp.eye(n_a, dtype=bool), jnp.inf, dmat)
    d_sorted = jnp.sort(dmat, axis=-1)[:, :k]
    assert np.allclose(np.asarray(d[0]), np.asarray(d_sorted), rtol=1e-4, atol=5e-4)

    # reported indices must point at pairs with the reported distance
    d_np = np.asarray(d[0]); idx_np = np.asarray(idxs[0]); dmat_np = np.asarray(dmat)
    rows_np = np.arange(n_a)[:, None]
    sel_np = idx_np + (idx_np >= rows_np)
    finite = np.isfinite(d_np)
    assert np.allclose(dmat_np[rows_np, sel_np][finite], d_np[finite], rtol=1e-4, atol=5e-4)

    # normalised vectors: unit length where finite, exactly 0 where masked/absent
    vn = np.asarray(vec_norm[0, :, :, :, 0])
    norms = np.linalg.norm(vn, axis=-1)
    assert np.allclose(np.where(finite, norms, 1.0), 1.0, atol=1e-3)
    assert np.all(vn[~finite] == 0.0)

    # --- case 2: multi-tile grid path (3 molecules, tile_m override) ---------
    n_a2 = 64
    r_b = jax.random.normal(key1, (1, n_a2, 3), dtype=jnp.float32)
    batch_id2 = (jnp.arange(n_a2) // 22).astype(jnp.int32)
    batch_mask2 = (batch_id2[:, None] != batch_id2[None, :])[None, :, :, None]

    d2, vec_norm2, idxs2 = distance(r_b, batch_mask2, max_neighbour=5, tile_m=32)
    jax.block_until_ready((d2, vec_norm2, idxs2))

    k2 = 5
    vref2 = r_b[0][:, None, :] - r_b[0][None, :, :]
    vref2 = jnp.where(batch_mask2[0], jnp.inf, vref2)
    dmat2 = jnp.sqrt(jnp.sum(vref2 * vref2, axis=-1))
    dmat2 = jnp.where(jnp.eye(n_a2, dtype=bool), jnp.inf, dmat2)
    d2_sorted = jnp.sort(dmat2, axis=-1)[:, :k2]
    assert d2.shape == (1, n_a2, k2)
    assert vec_norm2.shape == (1, n_a2, k2, 3, 1)
    assert np.allclose(np.asarray(d2[0]), np.asarray(d2_sorted), rtol=1e-4, atol=5e-4)

    print("KERNEL_OK")
</pallas_src>

<mosaic_0001>
module attributes {stable_mosaic.version = 11 : i64} {
  func.func @_distance_kernel(%arg0: i32, %arg1: memref<8x8xf32, #tpu.memory_space<vmem>>, %arg2: memref<8x128xf32, #tpu.memory_space<vmem>>, %arg3: memref<8x128xi8, #tpu.memory_space<vmem>>, %arg4: memref<8x7xi32, #tpu.memory_space<vmem>>) attributes {dimension_semantics = [#tpu.dimension_semantics<parallel>], iteration_bounds = array<i64: 1>, scalar_prefetch = 0 : i64, scratch_operands = 0 : i64, tpu.core_type = #tpu.core_type<tc>, window_params = [{transform_indices = @transform_0, window_bounds = array<i64: 8, 8>}, {pipeline_mode = #tpu.pipeline_mode<synchronous>, transform_indices = @transform_1, window_bounds = array<i64: 8, 128>}, {transform_indices = @transform_2, window_bounds = array<i64: 8, 128>}, {transform_indices = @transform_3, window_bounds = array<i64: 8, 7>}]} {
    %c0 = arith.constant 0 : index
    %c0_0 = arith.constant 0 : index
    %0 = vector.load %arg1[%c0, %c0_0] : memref<8x8xf32, #tpu.memory_space<vmem>>, vector<8x8xf32>
    %c0_1 = arith.constant 0 : index
    %c0_2 = arith.constant 0 : index
    %1 = vector.load %arg2[%c0_1, %c0_2] : memref<8x128xf32, #tpu.memory_space<vmem>>, vector<8x128xf32>
    %cst = arith.constant dense<0.000000e+00> : vector<8x128xf32>
    %2 = tpu.matmul %0, %1, %cst {dimension_numbers = #tpu.dot_dimension_numbers<[1], [0], [0], [1], [0, 0, 1, 1], [], []>} : vector<8x8xf32>, vector<8x128xf32>, vector<8x128xf32> -> vector<8x128xf32>
    %cst_3 = arith.constant 0.000000e+00 : f32
    %3 = vector.broadcast %cst_3 : f32 to vector<8x128xf32>
    %4 = arith.maximumf %2, %3 : vector<8x128xf32>
    %5 = tpu.iota {dimensions = array<i32: 1>} : vector<8x128xi32>
    %6 = tpu.bitcast %4 : vector<8x128xf32> -> vector<8x128xi32>
    %c-128_i32 = arith.constant -128 : i32
    %7 = vector.broadcast %c-128_i32 : i32 to vector<8x128xi32>
    %8 = arith.andi %6, %7 : vector<8x128xi32>
    %9 = arith.ori %8, %5 : vector<8x128xi32>
    %c0_4 = arith.constant 0 : index
    %c0_5 = arith.constant 0 : index
    %10 = vector.load %arg3[%c0_4, %c0_5] : memref<8x128xi8, #tpu.memory_space<vmem>>, vector<8x128xi8>
    %11 = arith.extsi %10 : vector<8x128xi8> to vector<8x128xi32>
    %c0_i32 = arith.constant 0 : i32
    %12 = vector.broadcast %c0_i32 : i32 to vector<8x128xi32>
    %13 = arith.cmpi ne, %11, %12 : vector<8x128xi32>
    %c2147483647_i32 = arith.constant 2147483647 : i32
    %14 = vector.broadcast %c2147483647_i32 : i32 to vector<8x128xi32>
    %15 = arith.select %13, %14, %9 : vector<8x128xi1>, vector<8x128xi32>
    %cst_6 = arith.constant dense<2147483647> : vector<8xi32>
    %16 = vector.multi_reduction <minsi>, %15, %cst_6 [1] : vector<8x128xi32> to vector<8xi32>
    %17 = vector.shape_cast %16 : vector<8xi32> to vector<8x1xi32>
    %18 = vector.broadcast %17 : vector<8x1xi32> to vector<8x128xi32>
    %19 = arith.cmpi eq, %15, %18 : vector<8x128xi32>
    %c2147483647_i32_7 = arith.constant 2147483647 : i32
    %20 = vector.broadcast %c2147483647_i32_7 : i32 to vector<8x128xi32>
    %21 = arith.select %19, %20, %15 : vector<8x128xi1>, vector<8x128xi32>
    %cst_8 = arith.constant dense<2147483647> : vector<8xi32>
    %22 = vector.multi_reduction <minsi>, %21, %cst_8 [1] : vector<8x128xi32> to vector<8xi32>
    %23 = vector.shape_cast %22 : vector<8xi32> to vector<8x1xi32>
    %24 = vector.broadcast %23 : vector<8x1xi32> to vector<8x128xi32>
    %25 = arith.cmpi eq, %21, %24 : vector<8x128xi32>
    %c2147483647_i32_9 = arith.constant 2147483647 : i32
    %26 = vector.broadcast %c2147483647_i32_9 : i32 to vector<8x128xi32>
    %27 = arith.select %25, %26, %21 : vector<8x128xi1>, vector<8x128xi32>
    %cst_10 = arith.constant dense<2147483647> : vector<8xi32>
    %28 = vector.multi_reduction <minsi>, %27, %cst_10 [1] : vector<8x128xi32> to vector<8xi32>
    %29 = vector.shape_cast %28 : vector<8xi32> to vector<8x1xi32>
    %30 = vector.broadcast %29 : vector<8x1xi32> to vector<8x128xi32>
    %31 = arith.cmpi eq, %27, %30 : vector<8x128xi32>
    %c2147483647_i32_11 = arith.constant 2147483647 : i32
    %32 = vector.broadcast %c2147483647_i32_11 : i32 to vector<8x128xi32>
    %33 = arith.select %31, %32, %27 : vector<8x128xi1>, vector<8x128xi32>
    %cst_12 = arith.constant dense<2147483647> : vector<8xi32>
    %34 = vector.multi_reduction <minsi>, %33, %cst_12 [1] : vector<8x128xi32> to vector<8xi32>
    %35 = vector.shape_cast %34 : vector<8xi32> to vector<8x1xi32>
    %36 = vector.broadcast %35 : vector<8x1xi32> to vector<8x128xi32>
    %37 = arith.cmpi eq, %33, %36 : vector<8x128xi32>
    %c2147483647_i32_13 = arith.constant 2147483647 : i32
    %38 = vector.broadcast %c2147483647_i32_13 : i32 to vector<8x128xi32>
    %39 = arith.select %37, %38, %33 : vector<8x128xi1>, vector<8x128xi32>
    %cst_14 = arith.constant dense<2147483647> : vector<8xi32>
    %40 = vector.multi_reduction <minsi>, %39, %cst_14 [1] : vector<8x128xi32> to vector<8xi32>
    %41 = vector.shape_cast %40 : vector<8xi32> to vector<8x1xi32>
    %42 = vector.broadcast %41 : vector<8x1xi32> to vector<8x128xi32>
    %43 = arith.cmpi eq, %39, %42 : vector<8x128xi32>
    %c2147483647_i32_15 = arith.constant 2147483647 : i32
    %44 = vector.broadcast %c2147483647_i32_15 : i32 to vector<8x128xi32>
    %45 = arith.select %43, %44, %39 : vector<8x128xi1>, vector<8x128xi32>
    %cst_16 = arith.constant dense<2147483647> : vector<8xi32>
    %46 = vector.multi_reduction <minsi>, %45, %cst_16 [1] : vector<8x128xi32> to vector<8xi32>
    %47 = vector.shape_cast %46 : vector<8xi32> to vector<8x1xi32>
    %48 = vector.broadcast %47 : vector<8x1xi32> to vector<8x128xi32>
    %49 = arith.cmpi eq, %45, %48 : vector<8x128xi32>
    %c2147483647_i32_17 = arith.constant 2147483647 : i32
    %50 = vector.broadcast %c2147483647_i32_17 : i32 to vector<8x128xi32>
    %51 = arith.select %49, %50, %45 : vector<8x128xi1>, vector<8x128xi32>
    %cst_18 = arith.constant dense<2147483647> : vector<8xi32>
    %52 = vector.multi_reduction <minsi>, %51, %cst_18 [1] : vector<8x128xi32> to vector<8xi32>
    %53 = vector.shape_cast %52 : vector<8xi32> to vector<8x1xi32>
    %54 = tpu.concatenate %17, %23, %29, %35, %41, %47, %53 in 1 : vector<8x1xi32>, vector<8x1xi32>, vector<8x1xi32>, vector<8x1xi32>, vector<8x1xi32>, vector<8x1xi32>, vector<8x1xi32> -> vector<8x7xi32>
    %c0_19 = arith.constant 0 : index
    %c0_20 = arith.constant 0 : index
    %55 = vector.load %arg4[%c0_19, %c0_20] : memref<8x7xi32, #tpu.memory_space<vmem>>, vector<8x7xi32>
    tpu.vector_store %arg4[%c0_19, %c0_20], %54 {strides = array<i32>} : memref<8x7xi32, #tpu.memory_space<vmem>>, vector<8x7xi32>,
    return
  }
  func.func @transform_0(%arg0: i32) -> (i32, i32) {
    %c0_i32 = arith.constant 0 : i32
    %c0_i32_0 = arith.constant 0 : i32
    return %arg0, %c0_i32 : i32, i32
  }
  func.func @transform_1(%arg0: i32) -> (i32, i32) {
    %c0_i32 = arith.constant 0 : i32
    %c0_i32_0 = arith.constant 0 : i32
    %c0_i32_1 = arith.constant 0 : i32
    return %c0_i32, %c0_i32_0 : i32, i32
  }
  func.func @transform_2(%arg0: i32) -> (i32, i32) {
    %c0_i32 = arith.constant 0 : i32
    %c0_i32_0 = arith.constant 0 : i32
    return %arg0, %c0_i32 : i32, i32
  }
  func.func @transform_3(%arg0: i32) -> (i32, i32) {
    %c0_i32 = arith.constant 0 : i32
    %c0_i32_0 = arith.constant 0 : i32
    return %arg0, %c0_i32 : i32, i32
  }
}

</mosaic_0001>

<bundles_post_ra>
// kernel: tpu_custom_call.1
= control target key start
LH: loop header
LB: loop body
LE: loop exit
PB: predicated region body
PF: predicated region fallthrough
CT: control target
= control target key end

     0   :  { %8 = vsyncpa [#allocation3], 0  ;;  %s381_s0 = inlined_call_operand.hbm [shape: f32[8,8], index: 0, kind: input, shape index: {}]   ;;  %s382_s1 = inlined_call_operand.hbm [shape: f32[8,128], index: 1, kind: input, shape index: {}]   ;;  %s383_s2 = inlined_call_operand.vmem [shape: s8[8,128], index: 2, kind: input, shape index: {}]   ;;  %s384_s3 = inlined_call_operand.hbm [shape: s32[8,7], index: 3, kind: output, shape index: {}]  }
   0x1   :  { %9 = vsyncpa [#allocation6], 0 }
   0x2   :  { %10 = vsyncpa [#allocation4], 0  ;;  %s344_s12 = smov [#allocation2]   ;;  %s345_s14 = smov [#allocation5]  }
   0x3   :  { %s17_s13 = sshll.u32 %s344_s12, 4  ;;  %s27_s15 = sshll.u32 %s345_s14, 4  ;;  %s18_s13 = int_to_ptr.vmem [resolvable:$true] %s17_s13  ;;  %s28_s15 = int_to_ptr.vmem [resolvable:$true] %s27_s15 }
   0x4   :  { %s286_s16 = scalar_lea.vmem %s18_s13, 128  ;;  %p291_p1 = scmp.lt.s32.totalorder %s18_s13, %s18_s13 }
   0x5   :  { %p287_p0 = scmp.ne.s32.totalorder %s18_s13, %s286_s16  ;;  %p292_p2 = scmp.lt.s32.totalorder %s286_s16, %s286_s16 }
   0x7   :  { %p293_p3 = por %p292_p2, %p291_p1 }
   0x9   :  { %p294_p4 = pnand %p293_p3, %p287_p0 }
   0xb   :  { %297 = shalt.err (!%p294_p4)
}
   0xc   :  { %20 = dma.hbm_to_vmem [thread:$0]  %s381_s0, 128, %s18_s13, [#allocation3]  }
   0xd   :  { %s306_s19 = scalar_lea.vmem %s28_s15, 128  ;;  %p311_p6 = scmp.lt.s32.totalorder %s28_s15, %s28_s15 }
   0xe   :  { %p307_p5 = scmp.ne.s32.totalorder %s28_s15, %s306_s19  ;;  %p312_p7 = scmp.lt.s32.totalorder %s306_s19, %s306_s19 }
  0x10   :  { %p313_p8 = por %p312_p7, %p311_p6 }
  0x12   :  { %p314_p9 = pnand %p313_p8, %p307_p5 }
  0x14   :  { %317 = shalt.err (!%p314_p9)
}
  0x15   :  { %30 = dma.hbm_to_vmem [thread:$0]  %s382_s1, 128, %s28_s15, [#allocation6]  }
  0x16   :  { %338 = dma.done.wait [#allocation3], 128  }
  0x17   :  { %339 = vsyncadd [#allocation3], 4294967168 }
  0x18   :  { %340 = dma.done.wait [#allocation6], 128  }
  0x19   :  { %341 = vsyncadd [#allocation6], 4294967168  ;;  %v346_v0 = vmov 0.0   ;;  %vm347_vm0 = vmmov 0   ;;  %vm41_vm1 = vcmask 64512   ;;  %v40_v1 = vld [vmem:[#allocation5] sm:$0xff]  ;;  %v116_v3 = vlaneseq }
  0x1a   :  { %268 = vmatprep.subr.mxu0 %v346_v0  ;;  %270 = vmatprep.mubr.msk.f32.mxu0 %vm347_vm0, %v346_v0  ;;  %v39_v2 = vld [vmem:[#allocation2] sm:$0xff]  ;;  %vm235_vm8 = vcmask 7168   ;;  %vm237_vm9 = vcmask 15360   ;;  %vm239_vm12 = vcmask 23552   ;;  %vm241_vm15 = vcmask 31744   ;;  %s348_s1 = smov [#allocation7]  }
  0x1b   :  { %269 = vmatpush3.msra.mxu0 %v40_v1  ;;  %v121_v4 = vld [vmem:[%s383_s2] sm:$0x3]  ;;  %v117_v8 = vand.u32 127, %v116_v3  ;;  %s255_s2 = sshll.u32 %s348_s1, 4  ;;  %s256_s2 = int_to_ptr.vmem [resolvable:$true] %s255_s2 }
  0x1c   :  { %271 = vmatmul.mubr.msk.f32.vlgmr.msra.gmra.mxu0 %vm41_vm1, %v39_v2  ;;  %v122_v6 = vunpack.c.0.s8 %v121_v4  ;;  %s318_s23 = scalar_lea.vmem %s256_s2, 128  ;;  %p323_p11 = scmp.lt.s32.totalorder %s256_s2, %s256_s2 }
  0x1d   :  { %p319_p10 = scmp.ne.s32.totalorder %s256_s2, %s318_s23  ;;  %p324_p12 = scmp.lt.s32.totalorder %s318_s23, %s318_s23 }
  0x1e   :  { %vm123_vm2 = vcmp.ne.s32.totalorder %v122_v6, 0 }
  0x1f   :  { %p325_p13 = por %p324_p12, %p323_p11 }
  0x21   :  { %p326_p0 = pnand %p325_p13, %p319_p10 }
  0xdc   :  { %v111_v5 = vpop.f32.mrf.mxu0 }
  0xdd   :  { %v115_v7 = vmax.f32 %v111_v5, 0.0 }
  0xde   :  { %v272_v9 = vpop.f32.mrf.mxu0 }
  0xdf   :  { %v119_v10 = vand.u32 4294967168, %v115_v7 }
  0xe1   :  { %v120_v11 = vor.u32 %v119_v10, %v117_v8 }
  0xe3   :  { %v124_v12 = vsel %vm123_vm2, 2147483647, %v120_v11  ;;  %vm243_vm2 = vcmask 39936  }
  0xe4   :  { %v126_v13 = vshra.s32 %v124_v12, 16  ;;  %v125_v15 = vand.u32 65535, %v124_v12 }
  0xe6   :  { %v128_v14 = vcvt.s32.f32 %v126_v13  ;;  %v127_v17 = vcvt.s32.f32 %v125_v15 }
  0xe8   :  { %129 = vmin.xlane.f32.xlu0 %v128_v14 }
 0x171   :  { %v130_v16 = vpop.xlane.xlu0 %129 }
 0x172   :  { %vm131_vm3 = vcmp.eq.f32.partialorder %v128_v14, %v130_v16  ;;  %v136_v19 = vcvt.f32.s32 %v130_v16 }
 0x173   :  { %v132_v18 = vsel %vm131_vm3, %v127_v17, inf }
 0x174   :  { %133 = vmin.xlane.f32.xlu0 %v132_v18  ;;  %v137_v21 = vshll.u32 %v136_v19, 16 }
 0x1fd   :  { %v134_v20 = vpop.xlane.xlu0 %133 }
 0x1fe   :  { %v135_v22 = vcvt.f32.s32 %v134_v20 }
 0x200   :  { %v138_v23 = vadd.s32 %v137_v21, %v135_v22 }
 0x202   :  { %vm139_vm4 = vcmp.eq.s32.totalorder %v124_v12, %v138_v23 }
 0x203   :  { %v140_v24 = vsel %vm139_vm4, 2147483647, %v124_v12 }
 0x204   :  { %v142_v25 = vshra.s32 %v140_v24, 16  ;;  %v141_v27 = vand.u32 65535, %v140_v24 }
 0x206   :  { %v144_v26 = vcvt.s32.f32 %v142_v25  ;;  %v143_v29 = vcvt.s32.f32 %v141_v27 }
 0x208   :  { %145 = vmin.xlane.f32.xlu1 %v144_v26 }
 0x291   :  { %v146_v28 = vpop.xlane.xlu1 %145 }
 0x292   :  { %vm147_vm5 = vcmp.eq.f32.partialorder %v144_v26, %v146_v28  ;;  %v152_v31 = vcvt.f32.s32 %v146_v28 }
 0x293   :  { %v148_v30 = vsel %vm147_vm5, %v143_v29, inf  ;;  %vm245_vm5 = vcmask 48128  }
 0x294   :  { %149 = vmin.xlane.f32.xlu1 %v148_v30  ;;  %v153_v33 = vshll.u32 %v152_v31, 16 }
 0x31d   :  { %v150_v32 = vpop.xlane.xlu1 %149 }
 0x31e   :  { %v151_v34 = vcvt.f32.s32 %v150_v32 }
 0x320   :  { %v154_v35 = vadd.s32 %v153_v33, %v151_v34 }
 0x322   :  { %vm155_vm6 = vcmp.eq.s32.totalorder %v140_v24, %v154_v35  ;;  %v236_v48 = vsel %vm235_vm8, %v138_v23, %v154_v35 }
 0x323   :  { %v156_v36 = vsel %vm155_vm6, 2147483647, %v140_v24  ;;  %vm247_vm6 = vcmask 56320  }
 0x324   :  { %v158_v37 = vshra.s32 %v156_v36, 16  ;;  %v157_v39 = vand.u32 65535, %v156_v36 }
 0x326   :  { %v160_v38 = vcvt.s32.f32 %v158_v37  ;;  %v159_v41 = vcvt.s32.f32 %v157_v39 }
 0x328   :  { %161 = vmin.xlane.f32.xlu0 %v160_v38 }
 0x3b1   :  { %v162_v40 = vpop.xlane.xlu0 %161 }
 0x3b2   :  { %vm163_vm7 = vcmp.eq.f32.partialorder %v160_v38, %v162_v40  ;;  %v168_v43 = vcvt.f32.s32 %v162_v40 }
 0x3b3   :  { %v164_v42 = vsel %vm163_vm7, %v159_v41, inf }
 0x3b4   :  { %165 = vmin.xlane.f32.xlu1 %v164_v42  ;;  %v169_v45 = vshll.u32 %v168_v43, 16 }
 0x43d   :  { %v166_v44 = vpop.xlane.xlu1 %165 }
 0x43e   :  { %v167_v46 = vcvt.f32.s32 %v166_v44 }
 0x440   :  { %v170_v47 = vadd.s32 %v169_v45, %v167_v46 }
 0x442   :  { %vm171_vm10 = vcmp.eq.s32.totalorder %v156_v36, %v170_v47  ;;  %v238_v49 = vsel %vm237_vm9, %v236_v48, %v170_v47 }
 0x443   :  { %v172_v50 = vsel %vm171_vm10, 2147483647, %v156_v36 }
 0x444   :  { %v174_v51 = vshra.s32 %v172_v50, 16  ;;  %v173_v53 = vand.u32 65535, %v172_v50 }
 0x446   :  { %v176_v52 = vcvt.s32.f32 %v174_v51  ;;  %v175_v55 = vcvt.s32.f32 %v173_v53 }
 0x448   :  { %177 = vmin.xlane.f32.xlu0 %v176_v52 }
 0x4d1   :  { %v178_v54 = vpop.xlane.xlu0 %177 }
 0x4d2   :  { %vm179_vm11 = vcmp.eq.f32.partialorder %v176_v52, %v178_v54  ;;  %v184_v57 = vcvt.f32.s32 %v178_v54 }
 0x4d3   :  { %v180_v56 = vsel %vm179_vm11, %v175_v55, inf }
 0x4d4   :  { %181 = vmin.xlane.f32.xlu1 %v180_v56  ;;  %v185_v59 = vshll.u32 %v184_v57, 16 }
 0x55d   :  { %v182_v58 = vpop.xlane.xlu1 %181 }
 0x55e   :  { %v183_v60 = vcvt.f32.s32 %v182_v58 }
 0x560   :  { %v186_v61 = vadd.s32 %v185_v59, %v183_v60 }
 0x562   :  { %vm187_vm13 = vcmp.eq.s32.totalorder %v172_v50, %v186_v61  ;;  %v240_v62 = vsel %vm239_vm12, %v238_v49, %v186_v61 }
 0x563   :  { %v188_v63 = vsel %vm187_vm13, 2147483647, %v172_v50 }
 0x564   :  { %v190_v0 = vshra.s32 %v188_v63, 16  ;;  %v189_v2 = vand.u32 65535, %v188_v63 }
 0x566   :  { %v192_v1 = vcvt.s32.f32 %v190_v0  ;;  %v191_v4 = vcvt.s32.f32 %v189_v2 }
 0x568   :  { %193 = vmin.xlane.f32.xlu0 %v192_v1 }
 0x5f1   :  { %v194_v3 = vpop.xlane.xlu0 %193 }
 0x5f2   :  { %vm195_vm14 = vcmp.eq.f32.partialorder %v192_v1, %v194_v3  ;;  %v200_v6 = vcvt.f32.s32 %v194_v3 }
 0x5f3   :  { %v196_v5 = vsel %vm195_vm14, %v191_v4, inf }
 0x5f4   :  { %197 = vmin.xlane.f32.xlu1 %v196_v5  ;;  %v201_v8 = vshll.u32 %v200_v6, 16 }
 0x67d   :  { %v198_v7 = vpop.xlane.xlu1 %197 }
 0x67e   :  { %v199_v9 = vcvt.f32.s32 %v198_v7 }
 0x680   :  { %v202_v10 = vadd.s32 %v201_v8, %v199_v9 }
 0x682   :  { %vm203_vm0 = vcmp.eq.s32.totalorder %v188_v63, %v202_v10  ;;  %v242_v11 = vsel %vm241_vm15, %v240_v62, %v202_v10 }
 0x683   :  { %v204_v12 = vsel %vm203_vm0, 2147483647, %v188_v63 }
 0x684   :  { %v206_v13 = vshra.s32 %v204_v12, 16  ;;  %v205_v15 = vand.u32 65535, %v204_v12 }
 0x686   :  { %v208_v14 = vcvt.s32.f32 %v206_v13  ;;  %v207_v17 = vcvt.s32.f32 %v205_v15 }
 0x688   :  { %209 = vmin.xlane.f32.xlu0 %v208_v14 }
 0x711   :  { %v210_v16 = vpop.xlane.xlu0 %209 }
 0x712   :  { %vm211_vm1 = vcmp.eq.f32.partialorder %v208_v14, %v210_v16  ;;  %v216_v19 = vcvt.f32.s32 %v210_v16 }
 0x713   :  { %v212_v18 = vsel %vm211_vm1, %v207_v17, inf }
 0x714   :  { %213 = vmin.xlane.f32.xlu1 %v212_v18  ;;  %v217_v21 = vshll.u32 %v216_v19, 16 }
 0x79d   :  { %v214_v20 = vpop.xlane.xlu1 %213 }
 0x79e   :  { %v215_v22 = vcvt.f32.s32 %v214_v20 }
 0x7a0   :  { %v218_v23 = vadd.s32 %v217_v21, %v215_v22 }
 0x7a2   :  { %vm219_vm3 = vcmp.eq.s32.totalorder %v204_v12, %v218_v23  ;;  %v244_v24 = vsel %vm243_vm2, %v242_v11, %v218_v23 }
 0x7a3   :  { %v220_v25 = vsel %vm219_vm3, 2147483647, %v204_v12 }
 0x7a4   :  { %v222_v26 = vshra.s32 %v220_v25, 16  ;;  %v221_v28 = vand.u32 65535, %v220_v25 }
 0x7a6   :  { %v224_v27 = vcvt.s32.f32 %v222_v26  ;;  %v223_v30 = vcvt.s32.f32 %v221_v28 }
 0x7a8   :  { %225 = vmin.xlane.f32.xlu0 %v224_v27 }
 0x831   :  { %v226_v29 = vpop.xlane.xlu0 %225 }
 0x832   :  { %vm227_vm4 = vcmp.eq.f32.partialorder %v224_v27, %v226_v29  ;;  %v232_v32 = vcvt.f32.s32 %v226_v29 }
 0x833   :  { %v228_v31 = vsel %vm227_vm4, %v223_v30, inf }
 0x834   :  { %229 = vmin.xlane.f32.xlu1 %v228_v31  ;;  %v233_v34 = vshll.u32 %v232_v32, 16 }
 0x8bd   :  { %v230_v33 = vpop.xlane.xlu1 %229 }
 0x8be   :  { %v231_v35 = vcvt.f32.s32 %v230_v33 }
 0x8c0   :  { %v234_v36 = vadd.s32 %v233_v34, %v231_v35 }
 0x8c2   :  { %v246_v37 = vsel %vm245_vm5, %v244_v24, %v234_v36 }
 0x8c3   :  { %248 = vst.msk [vmem:[#allocation7] sm:$0xff] %vm247_vm6, %v246_v37 }
 0x8c4   :  { %329 = shalt.err (!%p326_p0)
}
 0x8c5   :  { %258 = dma.vmem_to_hbm [thread:$0]  %s256_s2, 128, %s384_s3, [#allocation4]  }
 0x8c6   :  { %342 = dma.done.wait [#allocation4], 128  }
 0x8c7   :  { %343 = vsyncadd [#allocation4], 4294967168 }
 0x8c8   :  { %262 = vsyncpa [#allocation3], 1 }
 0x8c9   :  { %263 = vsyncpa [#allocation6], 1 }
 0x8ca   :  { %264 = vsyncpa [#allocation4], 1 }

</bundles_post_ra>
